<compile_context>
chip_gen: v7x
topology: tpu7x:2x2x1
jax: 0.10.0
libtpu: 0.0.40
codegen_flags: <defaults>
</compile_context>

<pallas_src>
import functools

import jax
import jax.numpy as jnp
from jax.experimental import pallas as pl
from jax.experimental.pallas import tpu as pltpu


def _lc_attn_kernel(selq_t_ref, x_ref, w_kv_ref, selt_ref, o_ref,
                    m_s, l_s, acc_s, *, n_actual, tn, inner):
    ti = pl.program_id(1)

    @pl.when(ti == 0)
    def _init():
        m_s[...] = jnp.full_like(m_s, -1e30)
        l_s[...] = jnp.zeros_like(l_s)
        acc_s[...] = jnp.zeros_like(acc_s)

    # Fused K/V projection for this token tile (dominant MXU work; bf16 in, f32 acc).
    xt = x_ref[0]                                                         # (tn, dim)
    kv = jnp.dot(xt, w_kv_ref[...], preferred_element_type=jnp.float32)   # (tn, 2*inner)
    k = kv[:, :inner]
    v = kv[:, inner:]

    # Per-head logits in (heads, tn) layout via one small A @ B^T MXU matmul:
    #   dots[h, t] = sum_d q_h[d] * k[t, d]   (scaled query already folded into selq_t)
    dots = jax.lax.dot_general(selq_t_ref[0], k,
                               dimension_numbers=(((1,), (1,)), ((), ())),
                               preferred_element_type=jnp.float32)        # (heads, tn)

    if n_actual % tn != 0:  # static: emitted only when a padded tail exists (~4 vregs/tile)
        tok = ti * tn + jax.lax.broadcasted_iota(jnp.int32, dots.shape, 1)
        dots = jnp.where(tok < n_actual, dots, -1e30)

    # Online softmax over the token (lane) axis, per head; stats are (heads, 1).
    m_prev = m_s[...]
    m_new = jnp.maximum(m_prev, jnp.max(dots, axis=1, keepdims=True))
    alpha = jnp.exp(m_prev - m_new)                                       # (heads, 1)
    p = jnp.exp(dots - m_new)                                             # (heads, tn)
    l_s[...] = alpha * l_s[...] + jnp.sum(p, axis=1, keepdims=True)

    # Weighted-V reduction on the MXU.  Accumulate the full (heads, inner) block
    # (same vreg count as (1, inner)); the per-head diagonal blocks are extracted
    # once in the finalize with the selt block mask.
    pv = jnp.dot(p, v, preferred_element_type=jnp.float32)                # (heads, inner)
    acc_s[...] = alpha * acc_s[...] + pv
    m_s[...] = m_new

    @pl.when(ti == pl.num_programs(1) - 1)
    def _finalize():
        l_inv = pl.reciprocal(l_s[...], approx=True)                      # EUP slot
        l_inv = l_inv * (2.0 - l_s[...] * l_inv)                          # one NR step (~free)
        out = jnp.sum(acc_s[...] * l_inv * selt_ref[...], axis=0, keepdims=True)  # (1, inner)
        o_ref[0] = out.astype(o_ref.dtype)


def _round_up(a: int, m: int) -> int:
    return ((a + m - 1) // m) * m


def lc_attention(x, w_qkv, w_out, b_out, *, heads, dim_head,
                 tn_max=1024, compute_dtype=jnp.bfloat16):
    """LCAttention forward (last-token-query attention).

    x:      (b, n, dim)
    w_qkv:  (dim, 3*inner)  math convention (x @ w_qkv), columns [q | k | v]
    w_out:  (inner, dim)    to_out Linear weight (identity if project_out=False)
    b_out:  (dim,)          to_out Linear bias   (zeros if project_out=False)
    returns (b, 1, dim)
    """
    b, n, dim = x.shape
    inner = heads * dim_head
    assert w_qkv.shape == (dim, 3 * inner)
    assert w_out.shape == (inner, dim)
    scale = dim_head ** (-0.5)

    w_q = w_qkv[:, :inner]
    w_kv = w_qkv[:, inner:]                                   # (dim, 2*inner) = [W_k | W_v]

    # Hoisted Q projection (scale folded in), then fold the query into the per-head
    # block selector so the kernel's logits are a single small matmul per tile.
    q_scaled = jnp.dot(x[:, -1, :].astype(jnp.float32), w_q.astype(jnp.float32),
                       precision="highest") * scale                            # (b, inner)
    head_of_col = jnp.arange(inner) // dim_head
    selt = (jnp.arange(heads)[:, None] == head_of_col[None, :]).astype(jnp.float32)  # (heads, inner)
    selq_t = selt[None, :, :] * q_scaled[:, None, :]                                 # (b, heads, inner)

    # Token tiling: large, MXU-slab aligned tile; pad + mask the ragged tail.
    sub = 16 if jnp.dtype(compute_dtype).itemsize < 4 else 8   # bf16 sublane packing
    if n <= tn_max:
        tn = _round_up(n, sub)
    else:
        align = 256 if tn_max >= 256 else sub                  # full MXU slabs on v6e/v7x
        tn = max(align, (tn_max // align) * align)
    num_tiles = pl.cdiv(n, tn)
    n_pad = num_tiles * tn
    xp = x if n_pad == n else jnp.pad(x, ((0, 0), (0, n_pad - n), (0, 0)))
    xp = xp.astype(compute_dtype)                              # bf16 operands -> native MXU rate
    w_kv_c = w_kv.astype(compute_dtype)

    kernel = functools.partial(_lc_attn_kernel, n_actual=n, tn=tn, inner=inner)

    def build(single_buffer_weights):
        def wspec(shape):
            kw = {"pipeline_mode": pl.Buffered(1)} if single_buffer_weights else {}
            return pl.BlockSpec(shape, lambda bi, ti: (0, 0), **kw)

        return pl.pallas_call(
            kernel,
            out_shape=jax.ShapeDtypeStruct((b, 1, inner), jnp.float32),
            grid_spec=pltpu.PrefetchScalarGridSpec(
                num_scalar_prefetch=0,
                grid=(b, num_tiles),
                in_specs=[
                    pl.BlockSpec((1, heads, inner), lambda bi, ti: (bi, 0, 0)),  # selq_t (per batch)
                    pl.BlockSpec((1, tn, dim), lambda bi, ti: (bi, ti, 0)),      # x token tile
                    wspec((dim, 2 * inner)),                                     # [W_k | W_v] resident
                    wspec((heads, inner)),                                       # head block mask
                ],
                out_specs=pl.BlockSpec((1, 1, inner), lambda bi, ti: (bi, 0, 0)),
                scratch_shapes=[
                    pltpu.VMEM((heads, 1), jnp.float32),       # running max
                    pltpu.VMEM((heads, 1), jnp.float32),       # running denominator
                    pltpu.VMEM((heads, inner), jnp.float32),   # running weighted-V accumulator
                ],
            ),
            compiler_params=pltpu.CompilerParams(
                dimension_semantics=("parallel", "arbitrary"),
                vmem_limit_bytes=48 * 1024 * 1024,
            ),
        )

    try:
        attn_out = build(True)(selq_t, xp, w_kv_c, selt)
    except Exception:
        # pipeline_mode=pl.Buffered(1) not supported by this JAX build; fall back to
        # default double-buffered weights (correctness identical).
        attn_out = build(False)(selq_t, xp, w_kv_c, selt)

    # Hoisted output projection (to_out Linear).  Dropout omitted (eval mode).
    y = jnp.dot(attn_out.reshape(b, inner), w_out.astype(jnp.float32), precision="highest")
    y = y + b_out.astype(jnp.float32)[None, :]
    return y.reshape(b, 1, dim).astype(x.dtype)


def _reference(x, w_qkv, w_out, b_out, heads, dim_head):
    """Plain-JAX mirror of the PyTorch LCAttention forward."""
    b, n, dim = x.shape
    inner = heads * dim_head
    scale = dim_head ** (-0.5)
    qkv = jnp.dot(x, w_qkv, precision="highest")
    q, k, v = jnp.split(qkv, 3, axis=-1)

    def to_heads(t):
        return t.reshape(b, n, heads, dim_head).transpose(0, 2, 1, 3)  # (b, h, n, d)

    q = to_heads(q)[:, :, -1:, :]
    k = to_heads(k)
    v = to_heads(v)
    dots = jnp.einsum('bhid,bhjd->bhij', q, k, precision="highest") * scale
    attn = jax.nn.softmax(dots, axis=-1)
    o = jnp.einsum('bhij,bhjd->bhid', attn, v, precision="highest")
    o = o.transpose(0, 2, 1, 3).reshape(b, 1, inner)
    return jnp.dot(o, w_out, precision="highest") + b_out


if __name__ == "__main__":
    B, N, DIM = 2, 8, 32
    HEADS, DIM_HEAD = 2, 64          # inner = 128 -> lane-aligned K/V split
    INNER = HEADS * DIM_HEAD

    key = jax.random.PRNGKey(0)
    kx, kqkv, kwo, kbo, kx2 = jax.random.split(key, 5)

    x = jax.random.normal(kx, (B, N, DIM), dtype=jnp.float32)
    bound_qkv = 1.0 / (DIM ** 0.5)
    w_qkv = jax.random.uniform(kqkv, (DIM, 3 * INNER),
                               minval=-bound_qkv, maxval=bound_qkv, dtype=jnp.float32)
    bound_o = 1.0 / (INNER ** 0.5)
    w_out = jax.random.uniform(kwo, (INNER, DIM),
                               minval=-bound_o, maxval=bound_o, dtype=jnp.float32)
    b_out = jax.random.uniform(kbo, (DIM,),
                               minval=-bound_o, maxval=bound_o, dtype=jnp.float32)

    ref = _reference(x, w_qkv, w_out, b_out, HEADS, DIM_HEAD)

    # 1) f32 compute path, single tile (tight-ish check of the algorithm).
    out_f32 = lc_attention(x, w_qkv, w_out, b_out, heads=HEADS, dim_head=DIM_HEAD,
                           compute_dtype=jnp.float32)
    jax.block_until_ready(out_f32)
    assert out_f32.shape == (B, 1, DIM)
    assert jnp.allclose(out_f32, ref, atol=2e-2, rtol=2e-2)

    # 2) bf16 compute path (default), single tile.
    out_bf16 = lc_attention(x, w_qkv, w_out, b_out, heads=HEADS, dim_head=DIM_HEAD)
    jax.block_until_ready(out_bf16)
    assert out_bf16.shape == (B, 1, DIM)
    assert jnp.allclose(out_bf16, ref, atol=3e-2, rtol=3e-2)

    # 3) bf16, ragged n with multiple token tiles (exercises the online-softmax
    #    carry across tiles and the padded-tail mask).
    N2 = 40
    x2 = jax.random.normal(kx2, (B, N2, DIM), dtype=jnp.float32)
    out2 = lc_attention(x2, w_qkv, w_out, b_out, heads=HEADS, dim_head=DIM_HEAD,
                        tn_max=16)
    jax.block_until_ready(out2)
    ref2 = _reference(x2, w_qkv, w_out, b_out, HEADS, DIM_HEAD)
    assert out2.shape == (B, 1, DIM)
    assert jnp.allclose(out2, ref2, atol=3e-2, rtol=3e-2)

    print("KERNEL_OK")
</pallas_src>

<mosaic_0001>
module attributes {stable_mosaic.version = 11 : i64} {
  func.func @_lc_attn_kernel(%arg0: i32, %arg1: i32, %arg2: memref<1x2x128xf32, #tpu.memory_space<vmem>>, %arg3: memref<1x8x32xf32, #tpu.memory_space<vmem>>, %arg4: memref<32x256xf32, #tpu.memory_space<vmem>>, %arg5: memref<2x128xf32, #tpu.memory_space<vmem>>, %arg6: memref<1x1x128xf32, #tpu.memory_space<vmem>>, %arg7: memref<2x1xf32, #tpu.memory_space<vmem>>, %arg8: memref<2x1xf32, #tpu.memory_space<vmem>>, %arg9: memref<2x128xf32, #tpu.memory_space<vmem>>) attributes {dimension_semantics = [#tpu.dimension_semantics<parallel>, #tpu.dimension_semantics<arbitrary>], iteration_bounds = array<i64: 2, 1>, scalar_prefetch = 0 : i64, scratch_operands = 3 : i64, tpu.core_type = #tpu.core_type<tc>, window_params = [{transform_indices = @transform_0, window_bounds = array<i64: 1, 2, 128>}, {transform_indices = @transform_1, window_bounds = array<i64: 1, 8, 32>}, {pipeline_mode = #tpu.pipeline_mode<synchronous>, transform_indices = @transform_2, window_bounds = array<i64: 32, 256>}, {pipeline_mode = #tpu.pipeline_mode<synchronous>, transform_indices = @transform_3, window_bounds = array<i64: 2, 128>}, {transform_indices = @transform_4, window_bounds = array<i64: 1, 1, 128>}]} {
    %c0_i32 = arith.constant 0 : i32
    %0 = arith.cmpi eq, %arg1, %c0_i32 : i32
    %1 = arith.extui %0 : i1 to i32
    %c0_i32_0 = arith.constant 0 : i32
    %2 = arith.cmpi ne, %1, %c0_i32_0 : i32
    scf.if %2 {
      %cst_26 = arith.constant -1.000000e+30 : f32
      %37 = vector.broadcast %cst_26 : f32 to vector<2x1xf32>
      %c0_27 = arith.constant 0 : index
      %c0_28 = arith.constant 0 : index
      %38 = vector.load %arg7[%c0_27, %c0_28] : memref<2x1xf32, #tpu.memory_space<vmem>>, vector<2x1xf32>
      tpu.vector_store %arg7[%c0_27, %c0_28], %37 {strides = array<i32>} : memref<2x1xf32, #tpu.memory_space<vmem>>, vector<2x1xf32>,
      %cst_29 = arith.constant 0.000000e+00 : f32
      %39 = vector.broadcast %cst_29 : f32 to vector<2x1xf32>
      %c0_30 = arith.constant 0 : index
      %c0_31 = arith.constant 0 : index
      %40 = vector.load %arg8[%c0_30, %c0_31] : memref<2x1xf32, #tpu.memory_space<vmem>>, vector<2x1xf32>
      tpu.vector_store %arg8[%c0_30, %c0_31], %39 {strides = array<i32>} : memref<2x1xf32, #tpu.memory_space<vmem>>, vector<2x1xf32>,
      %cst_32 = arith.constant 0.000000e+00 : f32
      %41 = vector.broadcast %cst_32 : f32 to vector<2x128xf32>
      %c0_33 = arith.constant 0 : index
      %c0_34 = arith.constant 0 : index
      %42 = vector.load %arg9[%c0_33, %c0_34] : memref<2x128xf32, #tpu.memory_space<vmem>>, vector<2x128xf32>
      tpu.vector_store %arg9[%c0_33, %c0_34], %41 {strides = array<i32>} : memref<2x128xf32, #tpu.memory_space<vmem>>, vector<2x128xf32>,
    } else {
    }
    %c0 = arith.constant 0 : index
    %c0_1 = arith.constant 0 : index
    %c0_2 = arith.constant 0 : index
    %3 = vector.load %arg3[%c0, %c0_1, %c0_2] : memref<1x8x32xf32, #tpu.memory_space<vmem>>, vector<1x8x32xf32>
    %4 = vector.shape_cast %3 : vector<1x8x32xf32> to vector<8x32xf32>
    %c0_3 = arith.constant 0 : index
    %c0_4 = arith.constant 0 : index
    %5 = vector.load %arg4[%c0_3, %c0_4] : memref<32x256xf32, #tpu.memory_space<vmem>>, vector<32x256xf32>
    %cst = arith.constant dense<0.000000e+00> : vector<8x256xf32>
    %6 = tpu.matmul %4, %5, %cst {dimension_numbers = #tpu.dot_dimension_numbers<[1], [0], [0], [1], [0, 0, 1, 1], [], []>} : vector<8x32xf32>, vector<32x256xf32>, vector<8x256xf32> -> vector<8x256xf32>
    %7 = vector.extract_strided_slice %6 {offsets = [0, 0], sizes = [8, 128], strides = [1, 1]} : vector<8x256xf32> to vector<8x128xf32>
    %8 = vector.extract_strided_slice %6 {offsets = [0, 128], sizes = [8, 128], strides = [1, 1]} : vector<8x256xf32> to vector<8x128xf32>
    %c0_5 = arith.constant 0 : index
    %c0_6 = arith.constant 0 : index
    %c0_7 = arith.constant 0 : index
    %9 = vector.load %arg2[%c0_5, %c0_6, %c0_7] : memref<1x2x128xf32, #tpu.memory_space<vmem>>, vector<1x2x128xf32>
    %10 = vector.shape_cast %9 : vector<1x2x128xf32> to vector<2x128xf32>
    %cst_8 = arith.constant dense<0.000000e+00> : vector<2x8xf32>
    %11 = tpu.matmul %10, %7, %cst_8 {dimension_numbers = #tpu.dot_dimension_numbers<[1], [1], [0], [0], [0, 0, 1, 0], [], []>} : vector<2x128xf32>, vector<8x128xf32>, vector<2x8xf32> -> vector<2x8xf32>
    %c0_9 = arith.constant 0 : index
    %c0_10 = arith.constant 0 : index
    %12 = vector.load %arg7[%c0_9, %c0_10] : memref<2x1xf32, #tpu.memory_space<vmem>>, vector<2x1xf32>
    %cst_11 = arith.constant dense<0xFF800000> : vector<2xf32>
    %13 = vector.multi_reduction <maximumf>, %11, %cst_11 [1] : vector<2x8xf32> to vector<2xf32>
    %14 = vector.shape_cast %13 : vector<2xf32> to vector<2x1xf32>
    %15 = arith.maximumf %12, %14 : vector<2x1xf32>
    %16 = arith.subf %12, %15 : vector<2x1xf32>
    %17 = math.exp %16 : vector<2x1xf32>
    %18 = vector.broadcast %15 : vector<2x1xf32> to vector<2x8xf32>
    %19 = arith.subf %11, %18 : vector<2x8xf32>
    %20 = math.exp %19 : vector<2x8xf32>
    %c0_12 = arith.constant 0 : index
    %c0_13 = arith.constant 0 : index
    %21 = vector.load %arg8[%c0_12, %c0_13] : memref<2x1xf32, #tpu.memory_space<vmem>>, vector<2x1xf32>
    %22 = arith.mulf %17, %21 : vector<2x1xf32>
    %cst_14 = arith.constant dense<0.000000e+00> : vector<2xf32>
    %23 = vector.multi_reduction <add>, %20, %cst_14 [1] : vector<2x8xf32> to vector<2xf32>
    %24 = vector.shape_cast %23 : vector<2xf32> to vector<2x1xf32>
    %25 = arith.addf %22, %24 : vector<2x1xf32>
    %c0_15 = arith.constant 0 : index
    %c0_16 = arith.constant 0 : index
    %26 = vector.load %arg8[%c0_15, %c0_16] : memref<2x1xf32, #tpu.memory_space<vmem>>, vector<2x1xf32>
    tpu.vector_store %arg8[%c0_15, %c0_16], %25 {strides = array<i32>} : memref<2x1xf32, #tpu.memory_space<vmem>>, vector<2x1xf32>,
    %cst_17 = arith.constant dense<0.000000e+00> : vector<2x128xf32>
    %27 = tpu.matmul %20, %8, %cst_17 {dimension_numbers = #tpu.dot_dimension_numbers<[1], [0], [0], [1], [0, 0, 1, 1], [], []>} : vector<2x8xf32>, vector<8x128xf32>, vector<2x128xf32> -> vector<2x128xf32>
    %c0_18 = arith.constant 0 : index
    %c0_19 = arith.constant 0 : index
    %28 = vector.load %arg9[%c0_18, %c0_19] : memref<2x128xf32, #tpu.memory_space<vmem>>, vector<2x128xf32>
    %29 = vector.broadcast %17 : vector<2x1xf32> to vector<2x128xf32>
    %30 = arith.mulf %29, %28 : vector<2x128xf32>
    %31 = arith.addf %30, %27 : vector<2x128xf32>
    %c0_20 = arith.constant 0 : index
    %c0_21 = arith.constant 0 : index
    %32 = vector.load %arg9[%c0_20, %c0_21] : memref<2x128xf32, #tpu.memory_space<vmem>>, vector<2x128xf32>
    tpu.vector_store %arg9[%c0_20, %c0_21], %31 {strides = array<i32>} : memref<2x128xf32, #tpu.memory_space<vmem>>, vector<2x128xf32>,
    %c0_22 = arith.constant 0 : index
    %c0_23 = arith.constant 0 : index
    %33 = vector.load %arg7[%c0_22, %c0_23] : memref<2x1xf32, #tpu.memory_space<vmem>>, vector<2x1xf32>
    tpu.vector_store %arg7[%c0_22, %c0_23], %15 {strides = array<i32>} : memref<2x1xf32, #tpu.memory_space<vmem>>, vector<2x1xf32>,
    %c0_i32_24 = arith.constant 0 : i32
    %34 = arith.cmpi eq, %arg1, %c0_i32_24 : i32
    %35 = arith.extui %34 : i1 to i32
    %c0_i32_25 = arith.constant 0 : i32
    %36 = arith.cmpi ne, %35, %c0_i32_25 : i32
    scf.if %36 {
      %c0_26 = arith.constant 0 : index
      %c0_27 = arith.constant 0 : index
      %37 = vector.load %arg8[%c0_26, %c0_27] : memref<2x1xf32, #tpu.memory_space<vmem>>, vector<2x1xf32>
      %38 = tpu.reciprocal %37 {approx = true} : vector<2x1xf32> -> vector<2x1xf32>
      %c0_28 = arith.constant 0 : index
      %c0_29 = arith.constant 0 : index
      %39 = vector.load %arg8[%c0_28, %c0_29] : memref<2x1xf32, #tpu.memory_space<vmem>>, vector<2x1xf32>
      %40 = arith.mulf %39, %38 : vector<2x1xf32>
      %cst_30 = arith.constant 2.000000e+00 : f32
      %41 = vector.broadcast %cst_30 : f32 to vector<2x1xf32>
      %42 = arith.subf %41, %40 : vector<2x1xf32>
      %43 = arith.mulf %38, %42 : vector<2x1xf32>
      %c0_31 = arith.constant 0 : index
      %c0_32 = arith.constant 0 : index
      %44 = vector.load %arg9[%c0_31, %c0_32] : memref<2x128xf32, #tpu.memory_space<vmem>>, vector<2x128xf32>
      %45 = vector.broadcast %43 : vector<2x1xf32> to vector<2x128xf32>
      %46 = arith.mulf %44, %45 : vector<2x128xf32>
      %c0_33 = arith.constant 0 : index
      %c0_34 = arith.constant 0 : index
      %47 = vector.load %arg5[%c0_33, %c0_34] : memref<2x128xf32, #tpu.memory_space<vmem>>, vector<2x128xf32>
      %48 = arith.mulf %46, %47 : vector<2x128xf32>
      %cst_35 = arith.constant dense<0.000000e+00> : vector<128xf32>
      %49 = vector.multi_reduction <add>, %48, %cst_35 [0] : vector<2x128xf32> to vector<128xf32>
      %50 = vector.shape_cast %49 : vector<128xf32> to vector<1x128xf32>
      %c0_36 = arith.constant 0 : index
      %c0_37 = arith.constant 0 : index
      %c0_38 = arith.constant 0 : index
      %51 = vector.load %arg6[%c0_36, %c0_37, %c0_38] : memref<1x1x128xf32, #tpu.memory_space<vmem>>, vector<1x1x128xf32>
      %52 = vector.shape_cast %51 : vector<1x1x128xf32> to vector<1x128xf32>
      %53 = vector.shape_cast %50 : vector<1x128xf32> to vector<1x1x128xf32>
      tpu.vector_store %arg6[%c0_36, %c0_37, %c0_38], %53 {strides = array<i32>} : memref<1x1x128xf32, #tpu.memory_space<vmem>>, vector<1x1x128xf32>,
    } else {
    }
    return
  }
  func.func @transform_0(%arg0: i32, %arg1: i32) -> (i32, i32, i32) {
    %c0_i32 = arith.constant 0 : i32
    %c0_i32_0 = arith.constant 0 : i32
    %c0_i32_1 = arith.constant 0 : i32
    return %arg0, %c0_i32, %c0_i32_0 : i32, i32, i32
  }
  func.func @transform_1(%arg0: i32, %arg1: i32) -> (i32, i32, i32) {
    %c0_i32 = arith.constant 0 : i32
    %c0_i32_0 = arith.constant 0 : i32
    return %arg0, %arg1, %c0_i32 : i32, i32, i32
  }
  func.func @transform_2(%arg0: i32, %arg1: i32) -> (i32, i32) {
    %c0_i32 = arith.constant 0 : i32
    %c0_i32_0 = arith.constant 0 : i32
    %c0_i32_1 = arith.constant 0 : i32
    return %c0_i32, %c0_i32_0 : i32, i32
  }
  func.func @transform_3(%arg0: i32, %arg1: i32) -> (i32, i32) {
    %c0_i32 = arith.constant 0 : i32
    %c0_i32_0 = arith.constant 0 : i32
    %c0_i32_1 = arith.constant 0 : i32
    return %c0_i32, %c0_i32_0 : i32, i32
  }
  func.func @transform_4(%arg0: i32, %arg1: i32) -> (i32, i32, i32) {
    %c0_i32 = arith.constant 0 : i32
    %c0_i32_0 = arith.constant 0 : i32
    %c0_i32_1 = arith.constant 0 : i32
    return %arg0, %c0_i32, %c0_i32_0 : i32, i32, i32
  }
}

module attributes {stable_mosaic.version = 11 : i64} {
  func.func @_lc_attn_kernel(%arg0: i32, %arg1: i32, %arg2: memref<1x2x128xf32, #tpu.memory_space<vmem>>, %arg3: memref<1x8x32xf32, #tpu.memory_space<vmem>>, %arg4: memref<32x256xf32, #tpu.memory_space<vmem>>, %arg5: memref<2x128xf32, #tpu.memory_space<vmem>>, %arg6: memref<1x1x128xf32, #tpu.memory_space<vmem>>, %arg7: memref<2x1xf32, #tpu.memory_space<vmem>>, %arg8: memref<2x1xf32, #tpu.memory_space<vmem>>, %arg9: memref<2x128xf32, #tpu.memory_space<vmem>>) attributes {dimension_semantics = [#tpu.dimension_semantics<parallel>, #tpu.dimension_semantics<arbitrary>], iteration_bounds = array<i64: 2, 1>, scalar_prefetch = 0 : i64, scratch_operands = 3 : i64, tpu.core_type = #tpu.core_type<tc>, window_params = [{transform_indices = @transform_0, window_bounds = array<i64: 1, 2, 128>}, {transform_indices = @transform_1, window_bounds = array<i64: 1, 8, 32>}, {pipeline_mode = #tpu.pipeline_mode<synchronous>, transform_indices = @transform_2, window_bounds = array<i64: 32, 256>}, {pipeline_mode = #tpu.pipeline_mode<synchronous>, transform_indices = @transform_3, window_bounds = array<i64: 2, 128>}, {transform_indices = @transform_4, window_bounds = array<i64: 1, 1, 128>}]} {
    %c0_i32 = arith.constant 0 : i32
    %0 = arith.cmpi eq, %arg1, %c0_i32 : i32
    %1 = arith.extui %0 : i1 to i32
    %c0_i32_0 = arith.constant 0 : i32
    %2 = arith.cmpi ne, %1, %c0_i32_0 : i32
    scf.if %2 {
      %cst_26 = arith.constant -1.000000e+30 : f32
      %37 = vector.broadcast %cst_26 : f32 to vector<2x1xf32>
      %c0_27 = arith.constant 0 : index
      %c0_28 = arith.constant 0 : index
      %38 = vector.load %arg7[%c0_27, %c0_28] : memref<2x1xf32, #tpu.memory_space<vmem>>, vector<2x1xf32>
      tpu.vector_store %arg7[%c0_27, %c0_28], %37 {strides = array<i32>} : memref<2x1xf32, #tpu.memory_space<vmem>>, vector<2x1xf32>,
      %cst_29 = arith.constant 0.000000e+00 : f32
      %39 = vector.broadcast %cst_29 : f32 to vector<2x1xf32>
      %c0_30 = arith.constant 0 : index
      %c0_31 = arith.constant 0 : index
      %40 = vector.load %arg8[%c0_30, %c0_31] : memref<2x1xf32, #tpu.memory_space<vmem>>, vector<2x1xf32>
      tpu.vector_store %arg8[%c0_30, %c0_31], %39 {strides = array<i32>} : memref<2x1xf32, #tpu.memory_space<vmem>>, vector<2x1xf32>,
      %cst_32 = arith.constant 0.000000e+00 : f32
      %41 = vector.broadcast %cst_32 : f32 to vector<2x128xf32>
      %c0_33 = arith.constant 0 : index
      %c0_34 = arith.constant 0 : index
      %42 = vector.load %arg9[%c0_33, %c0_34] : memref<2x128xf32, #tpu.memory_space<vmem>>, vector<2x128xf32>
      tpu.vector_store %arg9[%c0_33, %c0_34], %41 {strides = array<i32>} : memref<2x128xf32, #tpu.memory_space<vmem>>, vector<2x128xf32>,
    } else {
    }
    %c0 = arith.constant 0 : index
    %c0_1 = arith.constant 0 : index
    %c0_2 = arith.constant 0 : index
    %3 = vector.load %arg3[%c0, %c0_1, %c0_2] : memref<1x8x32xf32, #tpu.memory_space<vmem>>, vector<1x8x32xf32>
    %4 = vector.shape_cast %3 : vector<1x8x32xf32> to vector<8x32xf32>
    %c0_3 = arith.constant 0 : index
    %c0_4 = arith.constant 0 : index
    %5 = vector.load %arg4[%c0_3, %c0_4] : memref<32x256xf32, #tpu.memory_space<vmem>>, vector<32x256xf32>
    %cst = arith.constant dense<0.000000e+00> : vector<8x256xf32>
    %6 = tpu.matmul %4, %5, %cst {dimension_numbers = #tpu.dot_dimension_numbers<[1], [0], [0], [1], [0, 0, 1, 1], [], []>} : vector<8x32xf32>, vector<32x256xf32>, vector<8x256xf32> -> vector<8x256xf32>
    %7 = vector.extract_strided_slice %6 {offsets = [0, 0], sizes = [8, 128], strides = [1, 1]} : vector<8x256xf32> to vector<8x128xf32>
    %8 = vector.extract_strided_slice %6 {offsets = [0, 128], sizes = [8, 128], strides = [1, 1]} : vector<8x256xf32> to vector<8x128xf32>
    %c0_5 = arith.constant 0 : index
    %c0_6 = arith.constant 0 : index
    %c0_7 = arith.constant 0 : index
    %9 = vector.load %arg2[%c0_5, %c0_6, %c0_7] : memref<1x2x128xf32, #tpu.memory_space<vmem>>, vector<1x2x128xf32>
    %10 = vector.shape_cast %9 : vector<1x2x128xf32> to vector<2x128xf32>
    %cst_8 = arith.constant dense<0.000000e+00> : vector<2x8xf32>
    %11 = tpu.matmul %10, %7, %cst_8 {dimension_numbers = #tpu.dot_dimension_numbers<[1], [1], [0], [0], [0, 0, 1, 0], [], []>} : vector<2x128xf32>, vector<8x128xf32>, vector<2x8xf32> -> vector<2x8xf32>
    %c0_9 = arith.constant 0 : index
    %c0_10 = arith.constant 0 : index
    %12 = vector.load %arg7[%c0_9, %c0_10] : memref<2x1xf32, #tpu.memory_space<vmem>>, vector<2x1xf32>
    %cst_11 = arith.constant dense<0xFF800000> : vector<2xf32>
    %13 = vector.multi_reduction <maximumf>, %11, %cst_11 [1] : vector<2x8xf32> to vector<2xf32>
    %14 = vector.shape_cast %13 : vector<2xf32> to vector<2x1xf32>
    %15 = arith.maximumf %12, %14 : vector<2x1xf32>
    %16 = arith.subf %12, %15 : vector<2x1xf32>
    %17 = math.exp %16 : vector<2x1xf32>
    %18 = vector.broadcast %15 : vector<2x1xf32> to vector<2x8xf32>
    %19 = arith.subf %11, %18 : vector<2x8xf32>
    %20 = math.exp %19 : vector<2x8xf32>
    %c0_12 = arith.constant 0 : index
    %c0_13 = arith.constant 0 : index
    %21 = vector.load %arg8[%c0_12, %c0_13] : memref<2x1xf32, #tpu.memory_space<vmem>>, vector<2x1xf32>
    %22 = arith.mulf %17, %21 : vector<2x1xf32>
    %cst_14 = arith.constant dense<0.000000e+00> : vector<2xf32>
    %23 = vector.multi_reduction <add>, %20, %cst_14 [1] : vector<2x8xf32> to vector<2xf32>
    %24 = vector.shape_cast %23 : vector<2xf32> to vector<2x1xf32>
    %25 = arith.addf %22, %24 : vector<2x1xf32>
    %c0_15 = arith.constant 0 : index
    %c0_16 = arith.constant 0 : index
    %26 = vector.load %arg8[%c0_15, %c0_16] : memref<2x1xf32, #tpu.memory_space<vmem>>, vector<2x1xf32>
    tpu.vector_store %arg8[%c0_15, %c0_16], %25 {strides = array<i32>} : memref<2x1xf32, #tpu.memory_space<vmem>>, vector<2x1xf32>,
    %cst_17 = arith.constant dense<0.000000e+00> : vector<2x128xf32>
    %27 = tpu.matmul %20, %8, %cst_17 {dimension_numbers = #tpu.dot_dimension_numbers<[1], [0], [0], [1], [0, 0, 1, 1], [], []>} : vector<2x8xf32>, vector<8x128xf32>, vector<2x128xf32> -> vector<2x128xf32>
    %c0_18 = arith.constant 0 : index
    %c0_19 = arith.constant 0 : index
    %28 = vector.load %arg9[%c0_18, %c0_19] : memref<2x128xf32, #tpu.memory_space<vmem>>, vector<2x128xf32>
    %29 = vector.broadcast %17 : vector<2x1xf32> to vector<2x128xf32>
    %30 = arith.mulf %29, %28 : vector<2x128xf32>
    %31 = arith.addf %30, %27 : vector<2x128xf32>
    %c0_20 = arith.constant 0 : index
    %c0_21 = arith.constant 0 : index
    %32 = vector.load %arg9[%c0_20, %c0_21] : memref<2x128xf32, #tpu.memory_space<vmem>>, vector<2x128xf32>
    tpu.vector_store %arg9[%c0_20, %c0_21], %31 {strides = array<i32>} : memref<2x128xf32, #tpu.memory_space<vmem>>, vector<2x128xf32>,
    %c0_22 = arith.constant 0 : index
    %c0_23 = arith.constant 0 : index
    %33 = vector.load %arg7[%c0_22, %c0_23] : memref<2x1xf32, #tpu.memory_space<vmem>>, vector<2x1xf32>
    tpu.vector_store %arg7[%c0_22, %c0_23], %15 {strides = array<i32>} : memref<2x1xf32, #tpu.memory_space<vmem>>, vector<2x1xf32>,
    %c0_i32_24 = arith.constant 0 : i32
    %34 = arith.cmpi eq, %arg1, %c0_i32_24 : i32
    %35 = arith.extui %34 : i1 to i32
    %c0_i32_25 = arith.constant 0 : i32
    %36 = arith.cmpi ne, %35, %c0_i32_25 : i32
    scf.if %36 {
      %c0_26 = arith.constant 0 : index
      %c0_27 = arith.constant 0 : index
      %37 = vector.load %arg8[%c0_26, %c0_27] : memref<2x1xf32, #tpu.memory_space<vmem>>, vector<2x1xf32>
      %38 = tpu.reciprocal %37 {approx = true} : vector<2x1xf32> -> vector<2x1xf32>
      %c0_28 = arith.constant 0 : index
      %c0_29 = arith.constant 0 : index
      %39 = vector.load %arg8[%c0_28, %c0_29] : memref<2x1xf32, #tpu.memory_space<vmem>>, vector<2x1xf32>
      %40 = arith.mulf %39, %38 : vector<2x1xf32>
      %cst_30 = arith.constant 2.000000e+00 : f32
      %41 = vector.broadcast %cst_30 : f32 to vector<2x1xf32>
      %42 = arith.subf %41, %40 : vector<2x1xf32>
      %43 = arith.mulf %38, %42 : vector<2x1xf32>
      %c0_31 = arith.constant 0 : index
      %c0_32 = arith.constant 0 : index
      %44 = vector.load %arg9[%c0_31, %c0_32] : memref<2x128xf32, #tpu.memory_space<vmem>>, vector<2x128xf32>
      %45 = vector.broadcast %43 : vector<2x1xf32> to vector<2x128xf32>
      %46 = arith.mulf %44, %45 : vector<2x128xf32>
      %c0_33 = arith.constant 0 : index
      %c0_34 = arith.constant 0 : index
      %47 = vector.load %arg5[%c0_33, %c0_34] : memref<2x128xf32, #tpu.memory_space<vmem>>, vector<2x128xf32>
      %48 = arith.mulf %46, %47 : vector<2x128xf32>
      %cst_35 = arith.constant dense<0.000000e+00> : vector<128xf32>
      %49 = vector.multi_reduction <add>, %48, %cst_35 [0] : vector<2x128xf32> to vector<128xf32>
      %50 = vector.shape_cast %49 : vector<128xf32> to vector<1x128xf32>
      %c0_36 = arith.constant 0 : index
      %c0_37 = arith.constant 0 : index
      %c0_38 = arith.constant 0 : index
      %51 = vector.load %arg6[%c0_36, %c0_37, %c0_38] : memref<1x1x128xf32, #tpu.memory_space<vmem>>, vector<1x1x128xf32>
      %52 = vector.shape_cast %51 : vector<1x1x128xf32> to vector<1x128xf32>
      %53 = vector.shape_cast %50 : vector<1x128xf32> to vector<1x1x128xf32>
      tpu.vector_store %arg6[%c0_36, %c0_37, %c0_38], %53 {strides = array<i32>} : memref<1x1x128xf32, #tpu.memory_space<vmem>>, vector<1x1x128xf32>,
    } else {
    }
    return
  }
  func.func @transform_0(%arg0: i32, %arg1: i32) -> (i32, i32, i32) {
    %c0_i32 = arith.constant 0 : i32
    %c0_i32_0 = arith.constant 0 : i32
    %c0_i32_1 = arith.constant 0 : i32
    return %arg0, %c0_i32, %c0_i32_0 : i32, i32, i32
  }
  func.func @transform_1(%arg0: i32, %arg1: i32) -> (i32, i32, i32) {
    %c0_i32 = arith.constant 0 : i32
    %c0_i32_0 = arith.constant 0 : i32
    return %arg0, %arg1, %c0_i32 : i32, i32, i32
  }
  func.func @transform_2(%arg0: i32, %arg1: i32) -> (i32, i32) {
    %c0_i32 = arith.constant 0 : i32
    %c0_i32_0 = arith.constant 0 : i32
    %c0_i32_1 = arith.constant 0 : i32
    return %c0_i32, %c0_i32_0 : i32, i32
  }
  func.func @transform_3(%arg0: i32, %arg1: i32) -> (i32, i32) {
    %c0_i32 = arith.constant 0 : i32
    %c0_i32_0 = arith.constant 0 : i32
    %c0_i32_1 = arith.constant 0 : i32
    return %c0_i32, %c0_i32_0 : i32, i32
  }
  func.func @transform_4(%arg0: i32, %arg1: i32) -> (i32, i32, i32) {
    %c0_i32 = arith.constant 0 : i32
    %c0_i32_0 = arith.constant 0 : i32
    %c0_i32_1 = arith.constant 0 : i32
    return %arg0, %c0_i32, %c0_i32_0 : i32, i32, i32
  }
}

</mosaic_0001>

<bundles_post_ra>
// kernel: tpu_custom_call.1
= control target key start
LH: loop header
LB: loop body
LE: loop exit
PB: predicated region body
PF: predicated region fallthrough
CT: control target
= control target key end

     0   :  { %s1307_s0 = inlined_call_operand.hbm [shape: f32[2,2,128], index: 0, kind: input, shape index: {}]   ;;  %s1308_s1 = inlined_call_operand.hbm [shape: f32[2,8,32], index: 1, kind: input, shape index: {}]   ;;  %s1309_s2 = inlined_call_operand.hbm [shape: f32[32,256], index: 2, kind: input, shape index: {}]   ;;  %s1310_s3 = inlined_call_operand.vmem [shape: f32[2,128], index: 3, kind: input, shape index: {}]   ;;  %s1311_s4 = inlined_call_operand.hbm [shape: f32[2,1,128], index: 4, kind: output, shape index: {}]  }
   0x1   :  { %1316 = sst [smem:[#allocation16_spill]] %s1307_s0 }
   0x2   :  { %1317 = sst [smem:[#allocation17_spill]] %s1309_s2 }
   0x3   :  { %9 = vsyncpa [#allocation6], 0 }
   0x4   :  { %11 = vsyncpa [#allocation6 + $0x1], 0 }
   0x5   :  { %12 = vsyncpa [#allocation9], 0 }
   0x6   :  { %14 = vsyncpa [#allocation9 + $0x1], 0 }
   0x7   :  { %15 = vsyncpa [#allocation7], 0 }
   0x8   :  { %17 = vsyncpa [#allocation7 + $0x1], 0  ;;  %s1043_s15 = smov 0   ;;  %s1045_s16 = smov 0  }
   0x9   :  { %s1047_s17 = smov 0   ;;  %s1049_s18 = smov 0  }
   0xa   :  { %s1051_s19 = smov 0   ;;  %s1053_s20 = smov 0  }
   0xb LB: > { %s1074_s21 = sadd.s32 4294967295, %s1006_s20   ;;  %s697_s22 = sadd.s32 4294967294, %s1006_s20   ;;  %s1006_s20 = sphi %s1053_s20, %s23_s20   ;;  %s1002_s19 = sphi %s1051_s19, %s1340_s19   ;;  %s998_s18 = sphi %s1049_s18, %s1339_s18   ;;  %s994_s17 = sphi %s1047_s17, %s1338_s17   ;;  %s990_s16 = sphi %s1045_s16, %s1337_s16   ;;  %s986_s15 = sphi %s1043_s15, %s1336_s15  }
   0xc   : > { %p55_p0 = scmp.ne.s32.totalorder %s990_s16, %s986_s15  ;;  %p1312_p1 = scmp.eq.s32.totalorder %s1074_s21, 0 }
   0xd   : > { %p155_p3 = scmp.eq.s32.totalorder %s697_s22, 1  ;;  %p698_p5 = scmp.ge.s32.totalorder %s1006_s20, 1 }
   0xe   : > { %p1083_p4 = por %p1312_p1, %p55_p0  ;;  %p162_p7 = scmp.lt.s32.totalorder %s1006_s20, 3 }
   0xf   : > { %p1088_p6 = por %p155_p3, %p55_p0  ;;  %s1008_s26 = smov [#allocation10]  }
  0x10   : > { %s1318_s23 = scalar_select %p1083_p4, 1, 0 }
  0x11   : > { %s1319_s24 = scalar_select %p1088_p6, 1, 0 }
  0x12   : > { %p1093_p8 = pnand %p698_p5, %p162_p7  ;;  %s174_s27 = sshll.u32 %s1008_s26, 4  ;;  %s175_s27 = int_to_ptr.vmem [resolvable:$true] %s174_s27 }
  0x13   : > { %s35_s29 = sadd.s32 1, %s1002_s19  ;;  %s1322_s2 = sld [smem:[#allocation17_spill]] }
  0x14   : > { %s1320_s25 = scalar_select %p1093_p8, 1, 0 }
  0x15   : > { %p746_p9 = pneg %p1093_p8 }
  0x17   : > { %p1102_p11 = pnand %p746_p9, %p1312_p1 }
  0x19   : > { %s828_s6 = scalar_lea.hbm %s1322_s2, 1024  ;;  %p830_p13 = pneg %p1102_p11 }
  0x1a   : > { %p829_p12 = scmp.ne.s32.totalorder %s1322_s2, %s828_s6  ;;  %p835_p5 = scmp.lt.u32.totalorder %s828_s6, %s1322_s2 }
  0x1c   : > { %p831_p0 = pnand %p830_p13, %p829_p12 }
  0x1e   : > { %p832_p3 = pneg %p831_p0 }
  0x20   : > { %p837_p7 = pnand %p835_p5, %p832_p3 }
  0x22   : > { %840 = shalt.err (!%p837_p7)
}
  0x23   : > { %s841_s11 = scalar_lea.vmem %s175_s27, 1024  ;;  %p849_p2 = scmp.lt.s32.totalorder %s175_s27, %s175_s27 }
  0x24   : > { %p842_p9 = scmp.ne.s32.totalorder %s175_s27, %s841_s11  ;;  %p850_p6 = scmp.lt.s32.totalorder %s841_s11, %s841_s11 }
  0x26   : > { %p844_p10 = pnand %p842_p9, %p830_p13  ;;  %p851_p4 = por %p850_p6, %p849_p2 }
  0x28   : > { %p845_p1 = pneg %p844_p10 }
  0x2a   : > { %p852_p8 = pnand %p851_p4, %p845_p1 }
  0x2c   : > { %855 = shalt.err (!%p852_p8)
}
  0x2d   : > { %s1009_s12 = smov 256   ;;  %s1010_s13 = smov 16  }
  0x2e   : > { %749 = dma.hbm_to_vmem [thread:$0]  (!%p1102_p11), %s1322_s2, 1024, %s175_s27, [#allocation9], %s1009_s12, %s1009_s12, %s1010_s13  }
  0x2f   : > { %p37_p1 = scmp.ge.s32.totalorder %s35_s29, 2  ;;  %s42_s26 = sadd.s32 1, %s994_s17 }
  0x30   : > { %p49_p2 = scmp.ne.s32.totalorder %s994_s17, %s990_s16  ;;  %p50_p4 = scmp.eq.s32.totalorder %s1006_s20, 0 }
  0x31   : > { %s1342_s29 = smov (%p37_p1, %s35_s29), 0  ;;  %p1324_p8 = scmp.eq.s32.totalorder %s1074_s21, 1 }
  0x32   : > { %p1129_p6 = por %p50_p4, %p49_p2  ;;  %s39_s5 = ssub.s32 %s1002_s19, %s1342_s29 }
  0x33   : > { %p1135_p10 = por %p1324_p8, %p49_p2  ;;  %p762_p11 = scmp.lt.s32.totalorder %s1006_s20, 2 }
  0x34   : > { %p40_p12 = scmp.eq.s32.totalorder %s39_s5, 0  ;;  %s1143_s27 = sand.u32 1, %s994_s17  }
  0x35   : > { %s1325_s28 = scalar_select %p1135_p10, 1, 0 }
  0x36   : > { %s701_s6 = sshll.u32 %s1143_s27, 1  ;;  %s702_s8 = sshll.u32 %s1002_s19, 5 }
  0x37   : > { %s1147_s7 = scalar_select %p40_p12, %s994_s17, %s42_s26  }
  0x38   : > { %s1326_s0 = sld [smem:[#allocation16_spill]]  ;;  %s195_s12 = scalar_lea.vmem [#allocation5], %s701_s6 }
  0x39   : > { %s202_s13 = sshll.u32 %s195_s12, 4  ;;  %p1159_p13 = pnand %p762_p11, %p1129_p6  ;;  %s1155_s13 = int_to_ptr.vmem [resolvable:$true] %s202_s13 }
  0x3a   : > { %s703_s26 = sshll.u32 %s1143_s27, 3  ;;  %s192_s5 = scalar_lea.sflag [#allocation6], %s1143_s27 }
  0x3b   : > { %p858_p3 = pneg %p1159_p13 }
  0x3e   : > { %s1153_s11 = scalar_lea.hbm %s1326_s0, %s702_s8  ;;  %s861_s30 = scalar_lea.hbm %s1326_s0, 64 }
  0x3f   : > { %s856_s8 = scalar_lea.hbm %s1153_s11, 32  ;;  %p862_p9 = scmp.lt.u32.totalorder %s1153_s11, %s1326_s0 }
  0x40   : > { %p857_p0 = scmp.ne.s32.totalorder %s1153_s11, %s856_s8  ;;  %p863_p1 = scmp.lt.u32.totalorder %s861_s30, %s856_s8 }
  0x41   : > { %p865_p4 = scmp.lt.u32.totalorder %s856_s8, %s1153_s11 }
  0x42   : > { %p859_p5 = pnand %p858_p3, %p857_p0  ;;  %p864_p2 = por %p863_p1, %p862_p9 }
  0x44   : > { %p860_p7 = pneg %p859_p5  ;;  %p866_p6 = por %p865_p4, %p864_p2 }
  0x46   : > { %p867_p8 = pnand %p866_p6, %p860_p7 }
  0x48   : > { %870 = shalt.err (!%p867_p8)
}
  0x49   : > { %s871_s22 = scalar_lea.vmem %s1155_s13, 32  ;;  %s1011_s6 = smov [#allocation5]  }
  0x4a   : > { %p872_p11 = scmp.ne.s32.totalorder %s1155_s13, %s871_s22  ;;  %s876_s9 = sshll.u32 %s1011_s6, 4  ;;  %s877_s9 = int_to_ptr.vmem [resolvable:$false] %s876_s9 }
  0x4b   : > { %s878_s10 = scalar_lea.vmem %s877_s9, 64  ;;  %p879_p5 = scmp.lt.s32.totalorder %s1155_s13, %s877_s9 }
  0x4c   : > { %p874_p12 = pnand %p872_p11, %p858_p3  ;;  %p880_p9 = scmp.lt.s32.totalorder %s878_s10, %s871_s22 }
  0x4e   : > { %p875_p0 = pneg %p874_p12  ;;  %p881_p1 = por %p880_p9, %p879_p5 }
  0x50   : > { %p882_p2 = pnand %p881_p1, %p875_p0 }
  0x52   : > { %885 = shalt.err (!%p882_p2)
}
  0x53   : > { %753 = dma.hbm_to_vmem [thread:$0]  (!%p1159_p13), %s1153_s11, 32, %s1155_s13, %s192_s5  }
  0x54   : > { %s704_s8 = sshll.u32 %s1002_s19, 7  ;;  %s213_s22 = scalar_lea.vmem [#allocation8], %s703_s26 }
  0x55   : > { %s1195_s6 = scalar_lea.hbm %s1308_s1, %s704_s8  ;;  %s221_s9 = sshll.u32 %s213_s22, 4  ;;  %s222_s9 = int_to_ptr.vmem [resolvable:$true] %s221_s9 }
  0x56   : > { %s1328_s10 = sand.u32 1, %s1006_s20   ;;  %s886_s2 = scalar_lea.hbm %s1195_s6, 128 }
  0x57   : > { %s210_s0 = scalar_lea.sflag [#allocation9], %s1328_s10  ;;  %p887_p7 = scmp.ne.s32.totalorder %s1195_s6, %s886_s2 }
  0x58   : > { %s891_s5 = scalar_lea.hbm %s1308_s1, 256  ;;  %p892_p8 = scmp.lt.u32.totalorder %s1195_s6, %s1308_s1 }
  0x59   : > { %p889_p4 = pnand %p887_p7, %p858_p3  ;;  %p893_p11 = scmp.lt.u32.totalorder %s891_s5, %s886_s2 }
  0x5a   : > { %p895_p0 = scmp.lt.u32.totalorder %s886_s2, %s1195_s6 }
  0x5b   : > { %p890_p6 = pneg %p889_p4  ;;  %p894_p12 = por %p893_p11, %p892_p8 }
  0x5d   : > { %p896_p5 = por %p895_p0, %p894_p12 }
  0x5f   : > { %p897_p9 = pnand %p896_p5, %p890_p6 }
  0x61   : > { %900 = shalt.err (!%p897_p9)
}
  0x62   : > { %s901_s26 = scalar_lea.vmem %s222_s9, 128  ;;  %s1012_s30 = smov [#allocation8]  }
  0x63   : > { %p902_p1 = scmp.ne.s32.totalorder %s222_s9, %s901_s26  ;;  %s906_s12 = sshll.u32 %s1012_s30, 4  ;;  %s907_s12 = int_to_ptr.vmem [resolvable:$false] %s906_s12 }
  0x64   : > { %s908_s22 = scalar_lea.vmem %s907_s12, 256  ;;  %p909_p4 = scmp.lt.s32.totalorder %s222_s9, %s907_s12 }
  0x65   : > { %p904_p2 = pnand %p902_p1, %p858_p3  ;;  %p910_p10 = scmp.lt.s32.totalorder %s908_s22, %s901_s26 }
  0x67   : > { %p905_p7 = pneg %p904_p2  ;;  %p911_p8 = por %p910_p10, %p909_p4 }
  0x69   : > { %p912_p11 = pnand %p911_p8, %p905_p7 }
  0x6b   : > { %915 = shalt.err (!%p912_p11)
}
  0x6c   : > { %756 = dma.hbm_to_vmem [thread:$0]  (!%p1159_p13), %s1195_s6, 128, %s222_s9, %s210_s0  }
  0x6d   : > { %p1329_p6 = scmp.ne.s32.totalorder %s1320_s25, 0 }
  0x6e   : > { %s1223_s2 = sand.u32 (!%p1329_p6), 1, %s990_s16   ;;  %p1330_p10 = scmp.ne.s32.totalorder (!%p1329_p6), %s1318_s23, 0 }
  0x6f   : > { %230 = sbr.rel (%p1329_p6) target bundleno = 1180 (0x49c), region = 36  ;;  %s706_s10 = sshll.u32 (!%p1329_p6), %s1223_s2, 1 }
  0x70   : > { %s233_s11 = scalar_lea.sflag (!%p1329_p6), [#allocation6], %s1223_s2  ;;  %s1227_s13 = scalar_lea.vmem (!%p1329_p6), [#allocation5], %s706_s10 }
  0x76   : > { %969 = dma.done.wait (%p1330_p10), %s233_s11, 32  }
  0x77   : > { %971 = vsyncadd (%p1330_p10), %s233_s11, 4294967264  ;;  %s241_s0 = sand.u32 1, %s1074_s21   ;;  %s707_s25 = sshll.u32 %s1223_s2, 3 }
  0x78   : > { %s242_s14 = scalar_lea.sflag [#allocation9], %s241_s0  ;;  %s245_s6 = scalar_lea.vmem [#allocation8], %s707_s25 }
  0x79   : > { %973 = dma.done.wait (%p1330_p10), %s242_s14, 128  }
  0x7a   : > { %975 = vsyncadd (%p1330_p10), %s242_s14, 4294967168  ;;  %p1331_p13 = scmp.eq.s32.totalorder %s1074_s21, 0 }
  0x7c   : > { %977 = dma.done.wait (%p1331_p13), [#allocation9], 1024   ;;  %p1332_p3 = pmov %p1331_p13 }
  0x7d   : > { %v1013_v0 = vmov 0.0   ;;  %v288_v1 = vld [vmem:[#allocation10 + $0x8] sm:$0xff]  ;;  %v290_v2 = vld [vmem:[#allocation10 + $0x18] sm:$0xff]  ;;  %v287_v3 = vld [vmem:[#allocation10] sm:$0xff]  ;;  %vm295_vm0 = vcmask 261120   ;;  %vm1014_vm1 = vmmov 0  }
  0x7e   : > { %979 = vsyncadd (%p1332_p3), [#allocation9], 4294966272  ;;  %285 = vst [vmem:[#allocation4] sm:$0x3] %v1013_v0  ;;  %363 = vmatprep.mubr.f32.mxu0 %v1013_v0  ;;  %718 = vmatprep.subr.mxu1 %v1013_v0  ;;  %v728_v4 = vpack.c.bf16 %v290_v2, %v288_v1  ;;  %v289_v5 = vld [vmem:[#allocation10 + $0x10] sm:$0xff]  ;;  %v292_v6 = vld [vmem:[#allocation10 + $0x28] sm:$0xff] }
  0x7f   : > { %v294_v7 = vld [vmem:[#allocation10 + $0x38] sm:$0xff]  ;;  %v730_v8 = vpack.c.bf16 %v289_v5, %v287_v3  ;;  %v291_v10 = vld [vmem:[#allocation10 + $0x20] sm:$0xff]  ;;  %v293_v11 = vld [vmem:[#allocation10 + $0x30] sm:$0xff]  ;;  %720 = vmatprep.mubr.msk.f32.mxu1 %vm1014_vm1, %v1013_v0  ;;  %vm282_vm2 = vcmask 1024   ;;  %v1015_v17 = vmov -1e+30  }
  0x80   : > { %v732_v9 = vpack.c.bf16 %v294_v7, %v292_v6  ;;  %729 = vmatprep.subr.bf16.mxu0 %v728_v4  ;;  %v734_v12 = vpack.c.bf16 %v293_v11, %v291_v10  ;;  %v286_v13 = vld [vmem:[%s245_s6] sm:$0xff]  ;;  %v370_v16 = vld [vmem:[%s1227_s13] sm:$0x3]  ;;  %283 = vst.msk [vmem:[#allocation2] sm:$0x3] %vm282_vm2, %v1015_v17  ;;  %vm442_vm3 = vcmask 58368  }
  0x81   : > { %731 = vmatpush1.bf16.msra.mxu0 %v730_v8  ;;  %284 = vst.msk [vmem:[#allocation3] sm:$0x3] %vm282_vm2, %v1013_v0  ;;  %v1016_v21 = vmov 0   ;;  %vm466_vm4 = vcmask 64512   ;;  %v565_v49 = vld [vmem:[%s1310_s3] sm:$0x3] }
  0x82   : > { %733 = vmatprep.subr.bf16.mxu0 %v732_v9  ;;  %820 = vset.pattern.permute.xlu0 %v1016_v21  ;;  %vm567_vm5 = vcmask 1041408   ;;  %s711_s9 = sshll.u32 %s998_s18, 4  ;;  %s277_s5 = scalar_lea.vmem [#allocation11], %s1223_s2 }
  0x83   : > { %821 = vset.pattern.permute.xlu1 %v1016_v21  ;;  %s589_s27 = sshll.u32 %s277_s5, 4  ;;  %s1258_s30 = scalar_lea.hbm %s1311_s4, %s711_s9  ;;  %s1260_s27 = int_to_ptr.vmem [resolvable:$true] %s589_s27 }
  0x84   : > { %s577_s12 = scalar_lea.sflag [#allocation7], %s1223_s2  ;;  %s916_s22 = scalar_lea.vmem %s1260_s27, 16 }
  0x85   : > { %735 = vmatpush1.bf16.msra.mxu0 %v734_v12  ;;  %v540_v42 = vld [vmem:[#allocation4] sm:$0x3]  ;;  %p917_p12 = scmp.ne.s32.totalorder %s1260_s27, %s916_s22  ;;  %p1333_p0 = scmp.ne.s32.totalorder %s1325_s28, 0 }
  0x86   : > { %s1017_s18 = smov [#allocation11]  }
  0x87   : > { %v441_v22 = vld [vmem:[#allocation2] sm:$0x3]  ;;  %p918_p5 = pnand %p917_p12, %p1333_p0  ;;  %s920_s10 = sshll.u32 %s1017_s18, 4  ;;  %s921_s10 = int_to_ptr.vmem [resolvable:$false] %s920_s10 }
  0x88   : > { %709 = vmatmul.mubr.msk.f32.vlgmr.msra.gmra.mrb[0].mxu0 %vm295_vm0, %v286_v13  ;;  %v458_v33 = vld [vmem:[#allocation3] sm:$0x3]  ;;  %s922_s11 = scalar_lea.vmem %s921_s10, 32  ;;  %p923_p1 = scmp.lt.s32.totalorder %s1260_s27, %s921_s10 }
  0x89   : > { %p919_p9 = pneg %p918_p5  ;;  %p924_p2 = scmp.lt.s32.totalorder %s922_s11, %s916_s22 }
  0x8b   : > { %p925_p7 = por %p924_p2, %p923_p1 }
  0x8d   : > { %p926_p4 = pnand %p925_p7, %p919_p9 }
 0x15b   : > { %v365_v14 = vpop.f32.mrb[0].mxu0 }
 0x15c   : > { %v367_v15 = vpop.f32.mrb[1].mxu0  ;;  %719 = vmatpush3.xpose.msra.mxu1 %v365_v14 }
 0x15d   : > { %723 = vmatprep.subr.mxu1 %v1013_v0 }
 0x15f   : > { %721 = vmatmul.mubr.f32.vlgmr.msra.gmra.mrb[0].mxu1 %v370_v16 }
 0x160   : > { %724 = vmatpush3.msra.mxu1 %v367_v15  ;;  %725 = vmatprep.mubr.msk.f32.mxu1 %vm1014_vm1, %v1013_v0 }
 0x232   : > { %v437_v18 = vpop.f32.mrb[0].mxu1 }
 0x233   : > { %v722_v19 = vpop.f32.mrb[1].mxu1  ;;  %v443_v20 = vsel %vm442_vm3, %v437_v18, -inf }
 0x234   : > { %444 = vmax.xlane.f32.xlu0 %v443_v20 }
 0x2c1   : > { %v445_v23 = vpop.xlane.xlu0 %444 }
 0x2c2   : > { %v446_v24 = vmax.f32 %v441_v22, %v445_v23 }
 0x2c4   : > { %v447_v25 = vsub.f32 %v441_v22, %v446_v24  ;;  %549 = vst.msk [vmem:[#allocation2] sm:$0x3] %vm282_vm2, %v446_v24  ;;  %452 = vperm.xlu0 %820, %v446_v24  }
 0x2c6   : > { %v448_v31 = vmul.f32 1.442695, %v447_v25 }
 0x343   : > { %v453_v26 = vpop.permute.xlu0 %452 }
 0x344   : > { %v455_v27 = vsub.f32 %v437_v18, %v453_v26 }
 0x346   : > { %v456_v28 = vmul.f32 1.442695, %v455_v27 }
 0x348   : > { %822 = vpow2.f32 %v456_v28 }
 0x349   : > { %824 = vpow2.f32 %v448_v31 }
 0x352   : > { %v823_v29 = vpop.eup %822 }
 0x353   : > { %726 = vmatmul.mubr.msk.f32.vlgmr.msra.gmra.mrb[2].mxu1 %vm466_vm4, %v823_v29  ;;  %v460_v30 = vsel %vm442_vm3, %v823_v29, 0.0  ;;  %v825_v32 = vpop.eup %824 }
 0x354   : > { %461 = vadd.xlane.f32.xlu1 %v460_v30  ;;  %v459_v34 = vmul.f32 %v825_v32, %v458_v33 }
 0x365   : > { %543 = vperm.xlu1 %821, %v825_v32  }
 0x3e1   : > { %v462_v35 = vpop.xlane.xlu1 %461 }
 0x3e2   : > { %v463_v36 = vadd.f32 %v462_v35, %v459_v34 }
 0x3e4   : > { %465 = vst.msk [vmem:[#allocation3] sm:$0x3] %vm282_vm2, %v463_v36 }
 0x3e5   : > { %v544_v43 = vpop.permute.xlu1 %543 }
 0x3e6   : > { %v546_v44 = vmul.f32 %v544_v43, %v540_v42 }
 0x3eb   : > { %v553_v37 = vld [vmem:[#allocation3] sm:$0x3] }
 0x3ec   : > { %826 = vrcp.f32 %v553_v37 }
 0x3f6   : > { %v827_v38 = vpop.eup %826 }
 0x3f7   : > { %v555_v39 = vmul.f32 %v827_v38, %v553_v37 }
 0x3f9   : > { %v556_v40 = vsub.f32 2.0, %v555_v39 }
 0x3fb   : > { %v557_v41 = vmul.f32 %v827_v38, %v556_v40 }
 0x3fd   : > { %561 = vperm.xlu1 %821, %v557_v41  }
 0x426   : > { %v536_v45 = vpop.f32.mrb[2].mxu1 }
 0x427   : > { %v547_v46 = vadd.f32 %v546_v44, %v536_v45  ;;  %v727_v47 = vpop.f32.mrb[3].mxu1 }
 0x429   : > { %548 = vst [vmem:[#allocation4] sm:$0x3] %v547_v46 }
 0x430   : > { %v558_v48 = vld [vmem:[#allocation4] sm:$0x3] }
 0x47c   : > { %v562_v50 = vpop.permute.xlu1 %561 }
 0x47d   : > { %v564_v51 = vmul.f32 %v562_v50, %v558_v48 }
 0x47f   : > { %v566_v52 = vmul.f32 %v565_v49, %v564_v51 }
 0x481   : > { %v568_v53 = vsel %vm567_vm5, %v566_v52, 0.0 }
 0x482   : > { %v569_v54 = vrot.slane %v568_v53, 4 }
 0x484   : > { %v570_v55 = vadd.f32 %v569_v54, %v568_v53 }
 0x486   : > { %v571_v56 = vrot.slane %v570_v55, 2 }
 0x488   : > { %v572_v57 = vadd.f32 %v571_v56, %v570_v55 }
 0x48a   : > { %v573_v58 = vrot.slane %v572_v57, 1 }
 0x48c   : > { %v574_v59 = vadd.f32 %v573_v58, %v572_v57 }
 0x48e   : > { %575 = vst [vmem:[%s277_s5] sm:$0x1] %v574_v59 }
 0x48f   : > { %929 = shalt.err (!%p926_p4)
}
 0x490   : > { %s930_s2 = scalar_lea.hbm %s1258_s30, 16  ;;  %s934_s25 = scalar_lea.hbm %s1311_s4, 32 }
 0x491   : > { %p931_p8 = scmp.ne.s32.totalorder %s1258_s30, %s930_s2  ;;  %p935_p10 = scmp.lt.u32.totalorder %s1258_s30, %s1311_s4 }
 0x492   : > { %p936_p13 = scmp.lt.u32.totalorder %s934_s25, %s930_s2  ;;  %p938_p12 = scmp.lt.u32.totalorder %s930_s2, %s1258_s30 }
 0x493   : > { %p932_p11 = pnand %p931_p8, %p1333_p0 }
 0x494   : > { %p937_p3 = por %p936_p13, %p935_p10 }
 0x495   : > { %p933_p6 = pneg %p932_p11 }
 0x496   : > { %p939_p5 = por %p938_p12, %p937_p3 }
 0x498   : > { %p940_p9 = pnand %p939_p5, %p933_p6 }
 0x49a   : > { %943 = shalt.err (!%p940_p9)
}
 0x49b   : > { %744 = dma.vmem_to_hbm [thread:$0]  (%p1333_p0), %s1260_s27, 16, %s1258_s30, %s577_s12  }
 0x49c PF: > { %s601_s21 = sand.u32 1, %s986_s15   ;;  %p1334_p1 = scmp.ne.s32.totalorder %s1319_s24, 0 }
 0x49d   : > { %p1335_p2 = scmp.ge.s32.totalorder %s1006_s20, 2  ;;  %s602_s23 = scalar_lea.sflag [#allocation7], %s601_s21 }
 0x49f   : > { %p758_p7 = pnand %p1335_p2, %p1334_p1 }
 0x4a1   : > { %981 = dma.done.wait (!%p758_p7), %s602_s23, 16  }
 0x4a2   : > { %983 = vsyncadd (!%p758_p7), %s602_s23, 4294967280  ;;  %s23_s20 = sadd.s32 1, %s1006_s20   ;;  %s1336_s15 = smov %s990_s16 }
 0x4a3   : > { %p20_p4 = scmp.ge.s32.totalorder %s23_s20, 4   ;;  %s1337_s16 = smov %s994_s17 }
 0x4a4   : > { %s1338_s17 = smov %s1147_s7  ;;  %s1339_s18 = smov %s1002_s19 }
 0x4a5   : > { %s1340_s19 = smov %s1342_s29  ;;  %22 = sbr.rel (!%p20_p4) target bundleno = 11 (0xb), region = 106 }
 0x4ac   :  { %606 = vsyncpa [#allocation6], 1 }
 0x4ad   :  { %608 = vsyncpa [#allocation6 + $0x1], 1 }
 0x4ae   :  { %609 = vsyncpa [#allocation9], 1 }
 0x4af   :  { %611 = vsyncpa [#allocation9 + $0x1], 1 }
 0x4b0   :  { %612 = vsyncpa [#allocation7], 1 }
 0x4b1   :  { %614 = vsyncpa [#allocation7 + $0x1], 1 }

// kernel: tpu_custom_call.1
= control target key start
LH: loop header
LB: loop body
LE: loop exit
PB: predicated region body
PF: predicated region fallthrough
CT: control target
= control target key end

     0   :  { %s1307_s0 = inlined_call_operand.hbm [shape: f32[2,2,128], index: 0, kind: input, shape index: {}]   ;;  %s1308_s1 = inlined_call_operand.hbm [shape: f32[2,8,32], index: 1, kind: input, shape index: {}]   ;;  %s1309_s2 = inlined_call_operand.hbm [shape: f32[32,256], index: 2, kind: input, shape index: {}]   ;;  %s1310_s3 = inlined_call_operand.vmem [shape: f32[2,128], index: 3, kind: input, shape index: {}]   ;;  %s1311_s4 = inlined_call_operand.hbm [shape: f32[2,1,128], index: 4, kind: output, shape index: {}]  }
   0x1   :  { %1316 = sst [smem:[#allocation16_spill]] %s1307_s0 }
   0x2   :  { %1317 = sst [smem:[#allocation17_spill]] %s1309_s2 }
   0x3   :  { %9 = vsyncpa [#allocation6], 0 }
   0x4   :  { %11 = vsyncpa [#allocation6 + $0x1], 0 }
   0x5   :  { %12 = vsyncpa [#allocation9], 0 }
   0x6   :  { %14 = vsyncpa [#allocation9 + $0x1], 0 }
   0x7   :  { %15 = vsyncpa [#allocation7], 0 }
   0x8   :  { %17 = vsyncpa [#allocation7 + $0x1], 0  ;;  %s1043_s15 = smov 0   ;;  %s1045_s16 = smov 0  }
   0x9   :  { %s1047_s17 = smov 0   ;;  %s1049_s18 = smov 0  }
   0xa   :  { %s1051_s19 = smov 0   ;;  %s1053_s20 = smov 0  }
   0xb LB: > { %s1074_s21 = sadd.s32 4294967295, %s1006_s20   ;;  %s697_s22 = sadd.s32 4294967294, %s1006_s20   ;;  %s1006_s20 = sphi %s1053_s20, %s23_s20   ;;  %s1002_s19 = sphi %s1051_s19, %s1340_s19   ;;  %s998_s18 = sphi %s1049_s18, %s1339_s18   ;;  %s994_s17 = sphi %s1047_s17, %s1338_s17   ;;  %s990_s16 = sphi %s1045_s16, %s1337_s16   ;;  %s986_s15 = sphi %s1043_s15, %s1336_s15  }
   0xc   : > { %p55_p0 = scmp.ne.s32.totalorder %s990_s16, %s986_s15  ;;  %p1312_p1 = scmp.eq.s32.totalorder %s1074_s21, 0 }
   0xd   : > { %p155_p3 = scmp.eq.s32.totalorder %s697_s22, 1  ;;  %p698_p5 = scmp.ge.s32.totalorder %s1006_s20, 1 }
   0xe   : > { %p1083_p4 = por %p1312_p1, %p55_p0  ;;  %p162_p7 = scmp.lt.s32.totalorder %s1006_s20, 3 }
   0xf   : > { %p1088_p6 = por %p155_p3, %p55_p0  ;;  %s1008_s26 = smov [#allocation10]  }
  0x10   : > { %s1318_s23 = scalar_select %p1083_p4, 1, 0 }
  0x11   : > { %s1319_s24 = scalar_select %p1088_p6, 1, 0 }
  0x12   : > { %p1093_p8 = pnand %p698_p5, %p162_p7  ;;  %s174_s27 = sshll.u32 %s1008_s26, 4  ;;  %s175_s27 = int_to_ptr.vmem [resolvable:$true] %s174_s27 }
  0x13   : > { %s35_s29 = sadd.s32 1, %s1002_s19  ;;  %s1322_s2 = sld [smem:[#allocation17_spill]] }
  0x14   : > { %s1320_s25 = scalar_select %p1093_p8, 1, 0 }
  0x15   : > { %p746_p9 = pneg %p1093_p8 }
  0x17   : > { %p1102_p11 = pnand %p746_p9, %p1312_p1 }
  0x19   : > { %s828_s6 = scalar_lea.hbm %s1322_s2, 1024  ;;  %p830_p13 = pneg %p1102_p11 }
  0x1a   : > { %p829_p12 = scmp.ne.s32.totalorder %s1322_s2, %s828_s6  ;;  %p835_p5 = scmp.lt.u32.totalorder %s828_s6, %s1322_s2 }
  0x1c   : > { %p831_p0 = pnand %p830_p13, %p829_p12 }
  0x1e   : > { %p832_p3 = pneg %p831_p0 }
  0x20   : > { %p837_p7 = pnand %p835_p5, %p832_p3 }
  0x22   : > { %840 = shalt.err (!%p837_p7)
}
  0x23   : > { %s841_s11 = scalar_lea.vmem %s175_s27, 1024  ;;  %p849_p2 = scmp.lt.s32.totalorder %s175_s27, %s175_s27 }
  0x24   : > { %p842_p9 = scmp.ne.s32.totalorder %s175_s27, %s841_s11  ;;  %p850_p6 = scmp.lt.s32.totalorder %s841_s11, %s841_s11 }
  0x26   : > { %p844_p10 = pnand %p842_p9, %p830_p13  ;;  %p851_p4 = por %p850_p6, %p849_p2 }
  0x28   : > { %p845_p1 = pneg %p844_p10 }
  0x2a   : > { %p852_p8 = pnand %p851_p4, %p845_p1 }
  0x2c   : > { %855 = shalt.err (!%p852_p8)
}
  0x2d   : > { %s1009_s12 = smov 256   ;;  %s1010_s13 = smov 16  }
  0x2e   : > { %749 = dma.hbm_to_vmem [thread:$0]  (!%p1102_p11), %s1322_s2, 1024, %s175_s27, [#allocation9], %s1009_s12, %s1009_s12, %s1010_s13  }
  0x2f   : > { %p37_p1 = scmp.ge.s32.totalorder %s35_s29, 2  ;;  %s42_s26 = sadd.s32 1, %s994_s17 }
  0x30   : > { %p49_p2 = scmp.ne.s32.totalorder %s994_s17, %s990_s16  ;;  %p50_p4 = scmp.eq.s32.totalorder %s1006_s20, 0 }
  0x31   : > { %s1342_s29 = smov (%p37_p1, %s35_s29), 0  ;;  %p1324_p8 = scmp.eq.s32.totalorder %s1074_s21, 1 }
  0x32   : > { %p1129_p6 = por %p50_p4, %p49_p2  ;;  %s39_s5 = ssub.s32 %s1002_s19, %s1342_s29 }
  0x33   : > { %p1135_p10 = por %p1324_p8, %p49_p2  ;;  %p762_p11 = scmp.lt.s32.totalorder %s1006_s20, 2 }
  0x34   : > { %p40_p12 = scmp.eq.s32.totalorder %s39_s5, 0  ;;  %s1143_s27 = sand.u32 1, %s994_s17  }
  0x35   : > { %s1325_s28 = scalar_select %p1135_p10, 1, 0 }
  0x36   : > { %s701_s6 = sshll.u32 %s1143_s27, 1  ;;  %s702_s8 = sshll.u32 %s1002_s19, 5 }
  0x37   : > { %s1147_s7 = scalar_select %p40_p12, %s994_s17, %s42_s26  }
  0x38   : > { %s1326_s0 = sld [smem:[#allocation16_spill]]  ;;  %s195_s12 = scalar_lea.vmem [#allocation5], %s701_s6 }
  0x39   : > { %s202_s13 = sshll.u32 %s195_s12, 4  ;;  %p1159_p13 = pnand %p762_p11, %p1129_p6  ;;  %s1155_s13 = int_to_ptr.vmem [resolvable:$true] %s202_s13 }
  0x3a   : > { %s703_s26 = sshll.u32 %s1143_s27, 3  ;;  %s192_s5 = scalar_lea.sflag [#allocation6], %s1143_s27 }
  0x3b   : > { %p858_p3 = pneg %p1159_p13 }
  0x3e   : > { %s1153_s11 = scalar_lea.hbm %s1326_s0, %s702_s8  ;;  %s861_s30 = scalar_lea.hbm %s1326_s0, 64 }
  0x3f   : > { %s856_s8 = scalar_lea.hbm %s1153_s11, 32  ;;  %p862_p9 = scmp.lt.u32.totalorder %s1153_s11, %s1326_s0 }
  0x40   : > { %p857_p0 = scmp.ne.s32.totalorder %s1153_s11, %s856_s8  ;;  %p863_p1 = scmp.lt.u32.totalorder %s861_s30, %s856_s8 }
  0x41   : > { %p865_p4 = scmp.lt.u32.totalorder %s856_s8, %s1153_s11 }
  0x42   : > { %p859_p5 = pnand %p858_p3, %p857_p0  ;;  %p864_p2 = por %p863_p1, %p862_p9 }
  0x44   : > { %p860_p7 = pneg %p859_p5  ;;  %p866_p6 = por %p865_p4, %p864_p2 }
  0x46   : > { %p867_p8 = pnand %p866_p6, %p860_p7 }
  0x48   : > { %870 = shalt.err (!%p867_p8)
}
  0x49   : > { %s871_s22 = scalar_lea.vmem %s1155_s13, 32  ;;  %s1011_s6 = smov [#allocation5]  }
  0x4a   : > { %p872_p11 = scmp.ne.s32.totalorder %s1155_s13, %s871_s22  ;;  %s876_s9 = sshll.u32 %s1011_s6, 4  ;;  %s877_s9 = int_to_ptr.vmem [resolvable:$false] %s876_s9 }
  0x4b   : > { %s878_s10 = scalar_lea.vmem %s877_s9, 64  ;;  %p879_p5 = scmp.lt.s32.totalorder %s1155_s13, %s877_s9 }
  0x4c   : > { %p874_p12 = pnand %p872_p11, %p858_p3  ;;  %p880_p9 = scmp.lt.s32.totalorder %s878_s10, %s871_s22 }
  0x4e   : > { %p875_p0 = pneg %p874_p12  ;;  %p881_p1 = por %p880_p9, %p879_p5 }
  0x50   : > { %p882_p2 = pnand %p881_p1, %p875_p0 }
  0x52   : > { %885 = shalt.err (!%p882_p2)
}
  0x53   : > { %753 = dma.hbm_to_vmem [thread:$0]  (!%p1159_p13), %s1153_s11, 32, %s1155_s13, %s192_s5  }
  0x54   : > { %s704_s8 = sshll.u32 %s1002_s19, 7  ;;  %s213_s22 = scalar_lea.vmem [#allocation8], %s703_s26 }
  0x55   : > { %s1195_s6 = scalar_lea.hbm %s1308_s1, %s704_s8  ;;  %s221_s9 = sshll.u32 %s213_s22, 4  ;;  %s222_s9 = int_to_ptr.vmem [resolvable:$true] %s221_s9 }
  0x56   : > { %s1328_s10 = sand.u32 1, %s1006_s20   ;;  %s886_s2 = scalar_lea.hbm %s1195_s6, 128 }
  0x57   : > { %s210_s0 = scalar_lea.sflag [#allocation9], %s1328_s10  ;;  %p887_p7 = scmp.ne.s32.totalorder %s1195_s6, %s886_s2 }
  0x58   : > { %s891_s5 = scalar_lea.hbm %s1308_s1, 256  ;;  %p892_p8 = scmp.lt.u32.totalorder %s1195_s6, %s1308_s1 }
  0x59   : > { %p889_p4 = pnand %p887_p7, %p858_p3  ;;  %p893_p11 = scmp.lt.u32.totalorder %s891_s5, %s886_s2 }
  0x5a   : > { %p895_p0 = scmp.lt.u32.totalorder %s886_s2, %s1195_s6 }
  0x5b   : > { %p890_p6 = pneg %p889_p4  ;;  %p894_p12 = por %p893_p11, %p892_p8 }
  0x5d   : > { %p896_p5 = por %p895_p0, %p894_p12 }
  0x5f   : > { %p897_p9 = pnand %p896_p5, %p890_p6 }
  0x61   : > { %900 = shalt.err (!%p897_p9)
}
  0x62   : > { %s901_s26 = scalar_lea.vmem %s222_s9, 128  ;;  %s1012_s30 = smov [#allocation8]  }
  0x63   : > { %p902_p1 = scmp.ne.s32.totalorder %s222_s9, %s901_s26  ;;  %s906_s12 = sshll.u32 %s1012_s30, 4  ;;  %s907_s12 = int_to_ptr.vmem [resolvable:$false] %s906_s12 }
  0x64   : > { %s908_s22 = scalar_lea.vmem %s907_s12, 256  ;;  %p909_p4 = scmp.lt.s32.totalorder %s222_s9, %s907_s12 }
  0x65   : > { %p904_p2 = pnand %p902_p1, %p858_p3  ;;  %p910_p10 = scmp.lt.s32.totalorder %s908_s22, %s901_s26 }
  0x67   : > { %p905_p7 = pneg %p904_p2  ;;  %p911_p8 = por %p910_p10, %p909_p4 }
  0x69   : > { %p912_p11 = pnand %p911_p8, %p905_p7 }
  0x6b   : > { %915 = shalt.err (!%p912_p11)
}
  0x6c   : > { %756 = dma.hbm_to_vmem [thread:$0]  (!%p1159_p13), %s1195_s6, 128, %s222_s9, %s210_s0  }
  0x6d   : > { %p1329_p6 = scmp.ne.s32.totalorder %s1320_s25, 0 }
  0x6e   : > { %s1223_s2 = sand.u32 (!%p1329_p6), 1, %s990_s16   ;;  %p1330_p10 = scmp.ne.s32.totalorder (!%p1329_p6), %s1318_s23, 0 }
  0x6f   : > { %230 = sbr.rel (%p1329_p6) target bundleno = 1180 (0x49c), region = 36  ;;  %s706_s10 = sshll.u32 (!%p1329_p6), %s1223_s2, 1 }
  0x70   : > { %s233_s11 = scalar_lea.sflag (!%p1329_p6), [#allocation6], %s1223_s2  ;;  %s1227_s13 = scalar_lea.vmem (!%p1329_p6), [#allocation5], %s706_s10 }
  0x76   : > { %969 = dma.done.wait (%p1330_p10), %s233_s11, 32  }
  0x77   : > { %971 = vsyncadd (%p1330_p10), %s233_s11, 4294967264  ;;  %s241_s0 = sand.u32 1, %s1074_s21   ;;  %s707_s25 = sshll.u32 %s1223_s2, 3 }
  0x78   : > { %s242_s14 = scalar_lea.sflag [#allocation9], %s241_s0  ;;  %s245_s6 = scalar_lea.vmem [#allocation8], %s707_s25 }
  0x79   : > { %973 = dma.done.wait (%p1330_p10), %s242_s14, 128  }
  0x7a   : > { %975 = vsyncadd (%p1330_p10), %s242_s14, 4294967168  ;;  %p1331_p13 = scmp.eq.s32.totalorder %s1074_s21, 0 }
  0x7c   : > { %977 = dma.done.wait (%p1331_p13), [#allocation9], 1024   ;;  %p1332_p3 = pmov %p1331_p13 }
  0x7d   : > { %v1013_v0 = vmov 0.0   ;;  %v288_v1 = vld [vmem:[#allocation10 + $0x8] sm:$0xff]  ;;  %v290_v2 = vld [vmem:[#allocation10 + $0x18] sm:$0xff]  ;;  %v287_v3 = vld [vmem:[#allocation10] sm:$0xff]  ;;  %vm295_vm0 = vcmask 261120   ;;  %vm1014_vm1 = vmmov 0  }
  0x7e   : > { %979 = vsyncadd (%p1332_p3), [#allocation9], 4294966272  ;;  %285 = vst [vmem:[#allocation4] sm:$0x3] %v1013_v0  ;;  %363 = vmatprep.mubr.f32.mxu0 %v1013_v0  ;;  %718 = vmatprep.subr.mxu1 %v1013_v0  ;;  %v728_v4 = vpack.c.bf16 %v290_v2, %v288_v1  ;;  %v289_v5 = vld [vmem:[#allocation10 + $0x10] sm:$0xff]  ;;  %v292_v6 = vld [vmem:[#allocation10 + $0x28] sm:$0xff] }
  0x7f   : > { %v294_v7 = vld [vmem:[#allocation10 + $0x38] sm:$0xff]  ;;  %v730_v8 = vpack.c.bf16 %v289_v5, %v287_v3  ;;  %v291_v10 = vld [vmem:[#allocation10 + $0x20] sm:$0xff]  ;;  %v293_v11 = vld [vmem:[#allocation10 + $0x30] sm:$0xff]  ;;  %720 = vmatprep.mubr.msk.f32.mxu1 %vm1014_vm1, %v1013_v0  ;;  %vm282_vm2 = vcmask 1024   ;;  %v1015_v17 = vmov -1e+30  }
  0x80   : > { %v732_v9 = vpack.c.bf16 %v294_v7, %v292_v6  ;;  %729 = vmatprep.subr.bf16.mxu0 %v728_v4  ;;  %v734_v12 = vpack.c.bf16 %v293_v11, %v291_v10  ;;  %v286_v13 = vld [vmem:[%s245_s6] sm:$0xff]  ;;  %v370_v16 = vld [vmem:[%s1227_s13] sm:$0x3]  ;;  %283 = vst.msk [vmem:[#allocation2] sm:$0x3] %vm282_vm2, %v1015_v17  ;;  %vm442_vm3 = vcmask 58368  }
  0x81   : > { %731 = vmatpush1.bf16.msra.mxu0 %v730_v8  ;;  %284 = vst.msk [vmem:[#allocation3] sm:$0x3] %vm282_vm2, %v1013_v0  ;;  %v1016_v21 = vmov 0   ;;  %vm466_vm4 = vcmask 64512   ;;  %v565_v49 = vld [vmem:[%s1310_s3] sm:$0x3] }
  0x82   : > { %733 = vmatprep.subr.bf16.mxu0 %v732_v9  ;;  %820 = vset.pattern.permute.xlu0 %v1016_v21  ;;  %vm567_vm5 = vcmask 1041408   ;;  %s711_s9 = sshll.u32 %s998_s18, 4  ;;  %s277_s5 = scalar_lea.vmem [#allocation11], %s1223_s2 }
  0x83   : > { %821 = vset.pattern.permute.xlu1 %v1016_v21  ;;  %s589_s27 = sshll.u32 %s277_s5, 4  ;;  %s1258_s30 = scalar_lea.hbm %s1311_s4, %s711_s9  ;;  %s1260_s27 = int_to_ptr.vmem [resolvable:$true] %s589_s27 }
  0x84   : > { %s577_s12 = scalar_lea.sflag [#allocation7], %s1223_s2  ;;  %s916_s22 = scalar_lea.vmem %s1260_s27, 16 }
  0x85   : > { %735 = vmatpush1.bf16.msra.mxu0 %v734_v12  ;;  %v540_v42 = vld [vmem:[#allocation4] sm:$0x3]  ;;  %p917_p12 = scmp.ne.s32.totalorder %s1260_s27, %s916_s22  ;;  %p1333_p0 = scmp.ne.s32.totalorder %s1325_s28, 0 }
  0x86   : > { %s1017_s18 = smov [#allocation11]  }
  0x87   : > { %v441_v22 = vld [vmem:[#allocation2] sm:$0x3]  ;;  %p918_p5 = pnand %p917_p12, %p1333_p0  ;;  %s920_s10 = sshll.u32 %s1017_s18, 4  ;;  %s921_s10 = int_to_ptr.vmem [resolvable:$false] %s920_s10 }
  0x88   : > { %709 = vmatmul.mubr.msk.f32.vlgmr.msra.gmra.mrb[0].mxu0 %vm295_vm0, %v286_v13  ;;  %v458_v33 = vld [vmem:[#allocation3] sm:$0x3]  ;;  %s922_s11 = scalar_lea.vmem %s921_s10, 32  ;;  %p923_p1 = scmp.lt.s32.totalorder %s1260_s27, %s921_s10 }
  0x89   : > { %p919_p9 = pneg %p918_p5  ;;  %p924_p2 = scmp.lt.s32.totalorder %s922_s11, %s916_s22 }
  0x8b   : > { %p925_p7 = por %p924_p2, %p923_p1 }
  0x8d   : > { %p926_p4 = pnand %p925_p7, %p919_p9 }
 0x15b   : > { %v365_v14 = vpop.f32.mrb[0].mxu0 }
 0x15c   : > { %v367_v15 = vpop.f32.mrb[1].mxu0  ;;  %719 = vmatpush3.xpose.msra.mxu1 %v365_v14 }
 0x15d   : > { %723 = vmatprep.subr.mxu1 %v1013_v0 }
 0x15f   : > { %721 = vmatmul.mubr.f32.vlgmr.msra.gmra.mrb[0].mxu1 %v370_v16 }
 0x160   : > { %724 = vmatpush3.msra.mxu1 %v367_v15  ;;  %725 = vmatprep.mubr.msk.f32.mxu1 %vm1014_vm1, %v1013_v0 }
 0x232   : > { %v437_v18 = vpop.f32.mrb[0].mxu1 }
 0x233   : > { %v722_v19 = vpop.f32.mrb[1].mxu1  ;;  %v443_v20 = vsel %vm442_vm3, %v437_v18, -inf }
 0x234   : > { %444 = vmax.xlane.f32.xlu0 %v443_v20 }
 0x2c1   : > { %v445_v23 = vpop.xlane.xlu0 %444 }
 0x2c2   : > { %v446_v24 = vmax.f32 %v441_v22, %v445_v23 }
 0x2c4   : > { %v447_v25 = vsub.f32 %v441_v22, %v446_v24  ;;  %549 = vst.msk [vmem:[#allocation2] sm:$0x3] %vm282_vm2, %v446_v24  ;;  %452 = vperm.xlu0 %820, %v446_v24  }
 0x2c6   : > { %v448_v31 = vmul.f32 1.442695, %v447_v25 }
 0x343   : > { %v453_v26 = vpop.permute.xlu0 %452 }
 0x344   : > { %v455_v27 = vsub.f32 %v437_v18, %v453_v26 }
 0x346   : > { %v456_v28 = vmul.f32 1.442695, %v455_v27 }
 0x348   : > { %822 = vpow2.f32 %v456_v28 }
 0x349   : > { %824 = vpow2.f32 %v448_v31 }
 0x352   : > { %v823_v29 = vpop.eup %822 }
 0x353   : > { %726 = vmatmul.mubr.msk.f32.vlgmr.msra.gmra.mrb[2].mxu1 %vm466_vm4, %v823_v29  ;;  %v460_v30 = vsel %vm442_vm3, %v823_v29, 0.0  ;;  %v825_v32 = vpop.eup %824 }
 0x354   : > { %461 = vadd.xlane.f32.xlu1 %v460_v30  ;;  %v459_v34 = vmul.f32 %v825_v32, %v458_v33 }
 0x365   : > { %543 = vperm.xlu1 %821, %v825_v32  }
 0x3e1   : > { %v462_v35 = vpop.xlane.xlu1 %461 }
 0x3e2   : > { %v463_v36 = vadd.f32 %v462_v35, %v459_v34 }
 0x3e4   : > { %465 = vst.msk [vmem:[#allocation3] sm:$0x3] %vm282_vm2, %v463_v36 }
 0x3e5   : > { %v544_v43 = vpop.permute.xlu1 %543 }
 0x3e6   : > { %v546_v44 = vmul.f32 %v544_v43, %v540_v42 }
 0x3eb   : > { %v553_v37 = vld [vmem:[#allocation3] sm:$0x3] }
 0x3ec   : > { %826 = vrcp.f32 %v553_v37 }
 0x3f6   : > { %v827_v38 = vpop.eup %826 }
 0x3f7   : > { %v555_v39 = vmul.f32 %v827_v38, %v553_v37 }
 0x3f9   : > { %v556_v40 = vsub.f32 2.0, %v555_v39 }
 0x3fb   : > { %v557_v41 = vmul.f32 %v827_v38, %v556_v40 }
 0x3fd   : > { %561 = vperm.xlu1 %821, %v557_v41  }
 0x426   : > { %v536_v45 = vpop.f32.mrb[2].mxu1 }
 0x427   : > { %v547_v46 = vadd.f32 %v546_v44, %v536_v45  ;;  %v727_v47 = vpop.f32.mrb[3].mxu1 }
 0x429   : > { %548 = vst [vmem:[#allocation4] sm:$0x3] %v547_v46 }
 0x430   : > { %v558_v48 = vld [vmem:[#allocation4] sm:$0x3] }
 0x47c   : > { %v562_v50 = vpop.permute.xlu1 %561 }
 0x47d   : > { %v564_v51 = vmul.f32 %v562_v50, %v558_v48 }
 0x47f   : > { %v566_v52 = vmul.f32 %v565_v49, %v564_v51 }
 0x481   : > { %v568_v53 = vsel %vm567_vm5, %v566_v52, 0.0 }
 0x482   : > { %v569_v54 = vrot.slane %v568_v53, 4 }
 0x484   : > { %v570_v55 = vadd.f32 %v569_v54, %v568_v53 }
 0x486   : > { %v571_v56 = vrot.slane %v570_v55, 2 }
 0x488   : > { %v572_v57 = vadd.f32 %v571_v56, %v570_v55 }
 0x48a   : > { %v573_v58 = vrot.slane %v572_v57, 1 }
 0x48c   : > { %v574_v59 = vadd.f32 %v573_v58, %v572_v57 }
 0x48e   : > { %575 = vst [vmem:[%s277_s5] sm:$0x1] %v574_v59 }
 0x48f   : > { %929 = shalt.err (!%p926_p4)
}
 0x490   : > { %s930_s2 = scalar_lea.hbm %s1258_s30, 16  ;;  %s934_s25 = scalar_lea.hbm %s1311_s4, 32 }
 0x491   : > { %p931_p8 = scmp.ne.s32.totalorder %s1258_s30, %s930_s2  ;;  %p935_p10 = scmp.lt.u32.totalorder %s1258_s30, %s1311_s4 }
 0x492   : > { %p936_p13 = scmp.lt.u32.totalorder %s934_s25, %s930_s2  ;;  %p938_p12 = scmp.lt.u32.totalorder %s930_s2, %s1258_s30 }
 0x493   : > { %p932_p11 = pnand %p931_p8, %p1333_p0 }
 0x494   : > { %p937_p3 = por %p936_p13, %p935_p10 }
 0x495   : > { %p933_p6 = pneg %p932_p11 }
 0x496   : > { %p939_p5 = por %p938_p12, %p937_p3 }
 0x498   : > { %p940_p9 = pnand %p939_p5, %p933_p6 }
 0x49a   : > { %943 = shalt.err (!%p940_p9)
}
 0x49b   : > { %744 = dma.vmem_to_hbm [thread:$0]  (%p1333_p0), %s1260_s27, 16, %s1258_s30, %s577_s12  }
 0x49c PF: > { %s601_s21 = sand.u32 1, %s986_s15   ;;  %p1334_p1 = scmp.ne.s32.totalorder %s1319_s24, 0 }
 0x49d   : > { %p1335_p2 = scmp.ge.s32.totalorder %s1006_s20, 2  ;;  %s602_s23 = scalar_lea.sflag [#allocation7], %s601_s21 }
 0x49f   : > { %p758_p7 = pnand %p1335_p2, %p1334_p1 }
 0x4a1   : > { %981 = dma.done.wait (!%p758_p7), %s602_s23, 16  }
 0x4a2   : > { %983 = vsyncadd (!%p758_p7), %s602_s23, 4294967280  ;;  %s23_s20 = sadd.s32 1, %s1006_s20   ;;  %s1336_s15 = smov %s990_s16 }
 0x4a3   : > { %p20_p4 = scmp.ge.s32.totalorder %s23_s20, 4   ;;  %s1337_s16 = smov %s994_s17 }
 0x4a4   : > { %s1338_s17 = smov %s1147_s7  ;;  %s1339_s18 = smov %s1002_s19 }
 0x4a5   : > { %s1340_s19 = smov %s1342_s29  ;;  %22 = sbr.rel (!%p20_p4) target bundleno = 11 (0xb), region = 106 }
 0x4ac   :  { %606 = vsyncpa [#allocation6], 1 }
 0x4ad   :  { %608 = vsyncpa [#allocation6 + $0x1], 1 }
 0x4ae   :  { %609 = vsyncpa [#allocation9], 1 }
 0x4af   :  { %611 = vsyncpa [#allocation9 + $0x1], 1 }
 0x4b0   :  { %612 = vsyncpa [#allocation7], 1 }
 0x4b1   :  { %614 = vsyncpa [#allocation7 + $0x1], 1 }

</bundles_post_ra>
